<compile_context>
chip_gen: v6e
topology: v6e:2x2x1
jax: 0.10.0
libtpu: 0.0.40
codegen_flags: <defaults>
</compile_context>

<pallas_src>
import jax
import jax.numpy as jnp
from jax.experimental import pallas as pl
from jax.experimental.pallas import tpu as pltpu


def _siamese_kernel(alpha_ref, a_ref, p_ref, n_ref, w_ref, b_ref,
                    emb_ref, loss_ref):
    """Encode the triplet with one MXU matmul and compute the mean triplet loss.

    alpha_ref : (1, 1)          SMEM f32 scalar margin (runtime operand)
    a/p/n_ref : (B, D_in)       VMEM anchor / positive / negative images (flat)
    w_ref     : (D_in, Npad)    VMEM encoder weight, N zero-padded to 128-multiple
    b_ref     : (1, Npad)       VMEM f32 encoder bias (zero-padded)
    emb_ref   : (3, Bp, Npad)   VMEM f32 embeddings (out), Bp = ceil(B/8)*8
    loss_ref  : (1, 1)          SMEM f32 mean triplet loss (out)
    """
    B, D_in = a_ref.shape
    Bp = emb_ref.shape[1]

    # --- stack the triplet in VMEM, padding each image slot to Bp rows so the
    # --- per-image slices below are 8-sublane aligned (no cross-sublane work).
    def padded(ref):
        x = ref[...]
        if Bp == B:
            return x
        return jnp.concatenate(
            [x, jnp.zeros((Bp - B, D_in), dtype=x.dtype)], axis=0)

    x = jnp.concatenate([padded(a_ref), padded(p_ref), padded(n_ref)], axis=0)

    # --- encoder.encode on all three images at once: one MXU pass, M = 3*Bp ---
    # f32 accumulation regardless of the operand dtype (bf16 path on v6e/v7x).
    emb = jnp.dot(x, w_ref[...],
                  preferred_element_type=jnp.float32) + b_ref[...]

    ea = emb[0 * Bp:1 * Bp, :]          # sublane-aligned slices
    ep = emb[1 * Bp:2 * Bp, :]
    en = emb[2 * Bp:3 * Bp, :]

    # --- triplet loss on live f32 vregs (VPU mul + XLU lane reduce) ---
    d_ap = ea - ep
    r_ap = jnp.sum(d_ap * d_ap, axis=-1, keepdims=True)      # (Bp, 1)
    d_an = ea - en
    r_an = jnp.sum(d_an * d_an, axis=-1, keepdims=True)      # (Bp, 1)

    alpha = alpha_ref[0, 0]
    loss_per = jnp.maximum(r_ap - r_an + alpha, 0.0)          # relu, (Bp, 1)

    # Mask the zero-padded batch rows (they would each contribute relu(alpha)).
    row = jax.lax.broadcasted_iota(jnp.int32, (Bp, 1), 0)
    loss_per = jnp.where(row < B, loss_per, 0.0)
    loss_ref[0, 0] = jnp.sum(loss_per) * (1.0 / B)            # mean over real rows

    # Lane-dense, sublane-aligned full-slab stores (unmasked vst).
    emb_ref[0] = ea
    emb_ref[1] = ep
    emb_ref[2] = en


def siamese_forward(img_anchor, img_pos, img_neg, weight, bias, alpha,
                    mxu_dtype=jnp.float32):
    """img_*: (B, C, H, W).  weight: (C*H*W, D_emb).  bias: (D_emb,).

    `mxu_dtype=jnp.bfloat16` halves x/w HBM+VMEM traffic and doubles MXU
    throughput on v6e/v7x (loss/distance math stays f32); default f32 keeps
    the reference check tight.
    """
    B = img_anchor.shape[0]
    D_in, D_emb = weight.shape
    Bp = ((B + 7) // 8) * 8                       # sublane-aligned per-image slot
    Npad = ((D_emb + 127) // 128) * 128           # lane-dense output width

    # Free reshape views — no concat / no extra HBM materialization of inputs.
    a = img_anchor.reshape(B, D_in).astype(mxu_dtype)
    p = img_pos.reshape(B, D_in).astype(mxu_dtype)
    n = img_neg.reshape(B, D_in).astype(mxu_dtype)

    # Zero-pad weight/bias N -> Npad (padded columns give zero embeddings and
    # do not affect the distances); amortized / foldable parameter prep.
    w2 = jnp.zeros((D_in, Npad), mxu_dtype).at[:, :D_emb].set(
        weight.astype(mxu_dtype))
    b2 = jnp.zeros((1, Npad), jnp.float32).at[:, :D_emb].set(
        bias.astype(jnp.float32))
    alpha_arr = jnp.asarray(alpha, dtype=jnp.float32).reshape(1, 1)

    vmem_full = pl.BlockSpec(memory_space=pltpu.VMEM)   # full array, no tiling
    smem_full = pl.BlockSpec(memory_space=pltpu.SMEM)   # scalar in/out

    itemsize = jnp.dtype(mxu_dtype).itemsize
    cost = pl.CostEstimate(
        flops=2 * (3 * Bp) * D_in * Npad,
        transcendentals=0,
        bytes_accessed=(3 * B * D_in + D_in * Npad) * itemsize
                       + (Npad + 3 * Bp * Npad + 2) * 4,
    )

    emb, loss = pl.pallas_call(
        _siamese_kernel,
        out_shape=(
            jax.ShapeDtypeStruct((3, Bp, Npad), jnp.float32),
            jax.ShapeDtypeStruct((1, 1), jnp.float32),
        ),
        in_specs=[smem_full, vmem_full, vmem_full, vmem_full,
                  vmem_full, vmem_full],
        out_specs=(vmem_full, smem_full),
        cost_estimate=cost,
    )(alpha_arr, a, p, n, w2, b2)

    # Free XLA slices to recover the three (B, D_emb) embeddings.
    ea = emb[0, :B, :D_emb]
    ep = emb[1, :B, :D_emb]
    en = emb[2, :B, :D_emb]
    return ea, ep, en, loss[0, 0]


def _reference(img_anchor, img_pos, img_neg, weight, bias, alpha):
    """Plain-JAX reference matching the PyTorch forward semantics."""
    B = img_anchor.shape[0]
    enc = lambda x: x.reshape(B, -1) @ weight + bias
    ea, ep, en = enc(img_anchor), enc(img_pos), enc(img_neg)
    d = ea - ep
    r_ap = jnp.sum(d * d, axis=-1)
    d = ea - en
    r_an = jnp.sum(d * d, axis=-1)
    loss = jnp.maximum(r_ap - r_an + alpha, 0.0)
    return ea, ep, en, loss.mean()


if __name__ == "__main__":
    # Small shapes consistent with the module: NCHW images, triplet of them.
    B, C, H, W = 2, 4, 16, 16
    D_in = C * H * W          # 1024
    D_emb = 32
    ALPHA = 0.5

    key = jax.random.PRNGKey(0)
    k_a, k_p, k_n, k_w, k_b = jax.random.split(key, 5)

    img_anchor = jax.random.normal(k_a, (B, C, H, W), dtype=jnp.float32)
    img_pos    = jax.random.normal(k_p, (B, C, H, W), dtype=jnp.float32)
    img_neg    = jax.random.normal(k_n, (B, C, H, W), dtype=jnp.float32)

    # Deterministic synthetic encoder parameters (linear encoder).
    weight = jax.random.normal(k_w, (D_in, D_emb), dtype=jnp.float32) * (1.0 / D_in**0.5)
    bias   = jax.random.normal(k_b, (D_emb,), dtype=jnp.float32) * 0.01

    ea, ep, en, loss = jax.block_until_ready(
        siamese_forward(img_anchor, img_pos, img_neg, weight, bias, ALPHA)
    )

    # Correctness check against plain-JAX reference (f32 path).
    rea, rep_, ren, rloss = _reference(img_anchor, img_pos, img_neg, weight, bias, ALPHA)
    assert jnp.allclose(ea, rea, atol=1e-4, rtol=1e-4)
    assert jnp.allclose(ep, rep_, atol=1e-4, rtol=1e-4)
    assert jnp.allclose(en, ren, atol=1e-4, rtol=1e-4)
    assert jnp.allclose(loss, rloss, atol=1e-4, rtol=1e-4)

    print("KERNEL_OK")
</pallas_src>

<mosaic_0001>
module attributes {stable_mosaic.version = 11 : i64} {
  func.func @_siamese_kernel(%arg0: memref<1x1xf32, #tpu.memory_space<smem>>, %arg1: memref<2x1024xf32, #tpu.memory_space<vmem>>, %arg2: memref<2x1024xf32, #tpu.memory_space<vmem>>, %arg3: memref<2x1024xf32, #tpu.memory_space<vmem>>, %arg4: memref<1024x128xf32, #tpu.memory_space<vmem>>, %arg5: memref<1x128xf32, #tpu.memory_space<vmem>>, %arg6: memref<3x8x128xf32, #tpu.memory_space<vmem>>, %arg7: memref<1x1xf32, #tpu.memory_space<smem>>) attributes {dimension_semantics = [], scalar_prefetch = 0 : i64, scratch_operands = 0 : i64, tpu.core_type = #tpu.core_type<tc>} {
    %c0 = arith.constant 0 : index
    %c0_0 = arith.constant 0 : index
    %0 = vector.load %arg1[%c0, %c0_0] : memref<2x1024xf32, #tpu.memory_space<vmem>>, vector<2x1024xf32>
    %cst = arith.constant 0.000000e+00 : f32
    %1 = vector.broadcast %cst : f32 to vector<6x1024xf32>
    %2 = tpu.concatenate %0, %1 in 0 : vector<2x1024xf32>, vector<6x1024xf32> -> vector<8x1024xf32>
    %c0_1 = arith.constant 0 : index
    %c0_2 = arith.constant 0 : index
    %3 = vector.load %arg2[%c0_1, %c0_2] : memref<2x1024xf32, #tpu.memory_space<vmem>>, vector<2x1024xf32>
    %cst_3 = arith.constant 0.000000e+00 : f32
    %4 = vector.broadcast %cst_3 : f32 to vector<6x1024xf32>
    %5 = tpu.concatenate %3, %4 in 0 : vector<2x1024xf32>, vector<6x1024xf32> -> vector<8x1024xf32>
    %c0_4 = arith.constant 0 : index
    %c0_5 = arith.constant 0 : index
    %6 = vector.load %arg3[%c0_4, %c0_5] : memref<2x1024xf32, #tpu.memory_space<vmem>>, vector<2x1024xf32>
    %cst_6 = arith.constant 0.000000e+00 : f32
    %7 = vector.broadcast %cst_6 : f32 to vector<6x1024xf32>
    %8 = tpu.concatenate %6, %7 in 0 : vector<2x1024xf32>, vector<6x1024xf32> -> vector<8x1024xf32>
    %9 = tpu.concatenate %2, %5, %8 in 0 : vector<8x1024xf32>, vector<8x1024xf32>, vector<8x1024xf32> -> vector<24x1024xf32>
    %c0_7 = arith.constant 0 : index
    %c0_8 = arith.constant 0 : index
    %10 = vector.load %arg4[%c0_7, %c0_8] : memref<1024x128xf32, #tpu.memory_space<vmem>>, vector<1024x128xf32>
    %cst_9 = arith.constant dense<0.000000e+00> : vector<24x128xf32>
    %11 = tpu.matmul %9, %10, %cst_9 {dimension_numbers = #tpu.dot_dimension_numbers<[1], [0], [0], [1], [0, 0, 1, 1], [], []>} : vector<24x1024xf32>, vector<1024x128xf32>, vector<24x128xf32> -> vector<24x128xf32>
    %c0_10 = arith.constant 0 : index
    %c0_11 = arith.constant 0 : index
    %12 = vector.load %arg5[%c0_10, %c0_11] : memref<1x128xf32, #tpu.memory_space<vmem>>, vector<1x128xf32>
    %13 = vector.broadcast %12 : vector<1x128xf32> to vector<24x128xf32>
    %14 = arith.addf %11, %13 : vector<24x128xf32>
    %15 = vector.extract_strided_slice %14 {offsets = [0, 0], sizes = [8, 128], strides = [1, 1]} : vector<24x128xf32> to vector<8x128xf32>
    %16 = vector.extract_strided_slice %14 {offsets = [8, 0], sizes = [8, 128], strides = [1, 1]} : vector<24x128xf32> to vector<8x128xf32>
    %17 = vector.extract_strided_slice %14 {offsets = [16, 0], sizes = [8, 128], strides = [1, 1]} : vector<24x128xf32> to vector<8x128xf32>
    %18 = arith.subf %15, %16 : vector<8x128xf32>
    %19 = arith.mulf %18, %18 : vector<8x128xf32>
    %cst_12 = arith.constant dense<0.000000e+00> : vector<8xf32>
    %20 = vector.multi_reduction <add>, %19, %cst_12 [1] : vector<8x128xf32> to vector<8xf32>
    %21 = vector.shape_cast %20 : vector<8xf32> to vector<8x1xf32>
    %22 = arith.subf %15, %17 : vector<8x128xf32>
    %23 = arith.mulf %22, %22 : vector<8x128xf32>
    %cst_13 = arith.constant dense<0.000000e+00> : vector<8xf32>
    %24 = vector.multi_reduction <add>, %23, %cst_13 [1] : vector<8x128xf32> to vector<8xf32>
    %25 = vector.shape_cast %24 : vector<8xf32> to vector<8x1xf32>
    %c0_14 = arith.constant 0 : index
    %c0_15 = arith.constant 0 : index
    %26 = memref.load %arg0[%c0_14, %c0_15] : memref<1x1xf32, #tpu.memory_space<smem>>
    %27 = arith.subf %21, %25 : vector<8x1xf32>
    %28 = vector.broadcast %26 : f32 to vector<8x1xf32>
    %29 = arith.addf %27, %28 : vector<8x1xf32>
    %cst_16 = arith.constant 0.000000e+00 : f32
    %30 = vector.broadcast %cst_16 : f32 to vector<8x1xf32>
    %31 = arith.maximumf %29, %30 : vector<8x1xf32>
    %32 = tpu.iota {dimensions = array<i32: 0>} : vector<8x1xi32>
    %c2_i32 = arith.constant 2 : i32
    %33 = vector.broadcast %c2_i32 : i32 to vector<8x1xi32>
    %34 = arith.cmpi slt, %32, %33 : vector<8x1xi32>
    %cst_17 = arith.constant 0.000000e+00 : f32
    %35 = vector.broadcast %cst_17 : f32 to vector<8x1xf32>
    %36 = arith.select %34, %31, %35 : vector<8x1xi1>, vector<8x1xf32>
    %37 = vector.shape_cast %36 : vector<8x1xf32> to vector<1x8x1xf32>
    %cst_18 = arith.constant dense<0.000000e+00> : vector<1xf32>
    %38 = vector.multi_reduction <add>, %37, %cst_18 [1, 2] : vector<1x8x1xf32> to vector<1xf32>
    %39 = vector.shape_cast %38 : vector<1xf32> to vector<1x1x1xf32>
    %40 = vector.extract %39[0, 0, 0] : f32 from vector<1x1x1xf32>
    %cst_19 = arith.constant 5.000000e-01 : f32
    %41 = arith.mulf %40, %cst_19 : f32
    %c0_20 = arith.constant 0 : index
    %c0_21 = arith.constant 0 : index
    %42 = memref.load %arg7[%c0_20, %c0_21] : memref<1x1xf32, #tpu.memory_space<smem>>
    memref.store %41, %arg7[%c0_20, %c0_21] : memref<1x1xf32, #tpu.memory_space<smem>>
    %c0_22 = arith.constant 0 : index
    %c0_23 = arith.constant 0 : index
    %c0_24 = arith.constant 0 : index
    %43 = vector.load %arg6[%c0_22, %c0_23, %c0_24] : memref<3x8x128xf32, #tpu.memory_space<vmem>>, vector<1x8x128xf32>
    %44 = vector.shape_cast %43 : vector<1x8x128xf32> to vector<8x128xf32>
    %45 = vector.shape_cast %15 : vector<8x128xf32> to vector<1x8x128xf32>
    tpu.vector_store %arg6[%c0_22, %c0_23, %c0_24], %45 {strides = array<i32>} : memref<3x8x128xf32, #tpu.memory_space<vmem>>, vector<1x8x128xf32>,
    %c1 = arith.constant 1 : index
    %c0_25 = arith.constant 0 : index
    %c0_26 = arith.constant 0 : index
    %46 = vector.load %arg6[%c1, %c0_25, %c0_26] : memref<3x8x128xf32, #tpu.memory_space<vmem>>, vector<1x8x128xf32>
    %47 = vector.shape_cast %46 : vector<1x8x128xf32> to vector<8x128xf32>
    %48 = vector.shape_cast %16 : vector<8x128xf32> to vector<1x8x128xf32>
    tpu.vector_store %arg6[%c1, %c0_25, %c0_26], %48 {strides = array<i32>} : memref<3x8x128xf32, #tpu.memory_space<vmem>>, vector<1x8x128xf32>,
    %c2 = arith.constant 2 : index
    %c0_27 = arith.constant 0 : index
    %c0_28 = arith.constant 0 : index
    %49 = vector.load %arg6[%c2, %c0_27, %c0_28] : memref<3x8x128xf32, #tpu.memory_space<vmem>>, vector<1x8x128xf32>
    %50 = vector.shape_cast %49 : vector<1x8x128xf32> to vector<8x128xf32>
    %51 = vector.shape_cast %17 : vector<8x128xf32> to vector<1x8x128xf32>
    tpu.vector_store %arg6[%c2, %c0_27, %c0_28], %51 {strides = array<i32>} : memref<3x8x128xf32, #tpu.memory_space<vmem>>, vector<1x8x128xf32>,
    return
  }
}

</mosaic_0001>

<bundles_post_ra>
// kernel: tpu_custom_call.1
= control target key start
LH: loop header
LB: loop body
LE: loop exit
PB: predicated region body
PF: predicated region fallthrough
CT: control target
= control target key end

     0   :  { %14 = vsyncpa [#allocation4], 0  ;;  %s1208_s0 = inlined_call_operand.<no memory space> [shape: f32[1,1], index: 0, kind: input, shape index: {}]   ;;  %s1209_s1 = inlined_call_operand.hbm [shape: f32[2,1024], index: 1, kind: input, shape index: {}]   ;;  %s1210_s2 = inlined_call_operand.hbm [shape: f32[2,1024], index: 2, kind: input, shape index: {}]   ;;  %s1211_s3 = inlined_call_operand.hbm [shape: f32[2,1024], index: 3, kind: input, shape index: {}]   ;;  %s1212_s4 = inlined_call_operand.hbm [shape: f32[1024,128], index: 4, kind: input, shape index: {}]   ;;  %s1213_s5 = inlined_call_operand.vmem [shape: f32[1,128], index: 5, kind: input, shape index: {}]   ;;  %s1214_s6 = inlined_call_operand.hbm [shape: f32[3,8,128], index: 6, kind: output, shape index: {0}]   ;;  %s1215_s7 = inlined_call_operand.hbm [shape: f32[1,1], index: 7, kind: output, shape index: {1}]  }
   0x1   :  { %15 = vsyncpa [#allocation8], 0 }
   0x2   :  { %16 = vsyncpa [#allocation11], 0 }
   0x3   :  { %17 = vsyncpa [#allocation5], 0 }
   0x4   :  { %18 = vsyncpa [#allocation6], 0  ;;  %s1087_s24 = smov [#allocation7]   ;;  %s1088_s26 = smov [#allocation3]  }
   0x5   :  { %s37_s25 = sshll.u32 %s1087_s24, 4  ;;  %s27_s27 = sshll.u32 %s1088_s26, 4  ;;  %s38_s25 = int_to_ptr.vmem [resolvable:$true] %s37_s25  ;;  %s28_s27 = int_to_ptr.vmem [resolvable:$true] %s27_s27 }
   0x6   :  { %s977_s28 = scalar_lea.vmem %s38_s25, 256  ;;  %p982_p1 = scmp.lt.s32.totalorder %s38_s25, %s38_s25 }
   0x7   :  { %p978_p0 = scmp.ne.s32.totalorder %s38_s25, %s977_s28  ;;  %p983_p2 = scmp.lt.s32.totalorder %s977_s28, %s977_s28 }
   0x9   :  { %p984_p3 = por %p983_p2, %p982_p1 }
   0xb   :  { %p985_p4 = pnand %p984_p3, %p978_p0 }
   0xd   :  { %988 = shalt.err (!%p985_p4)
}
   0xe   :  { %40 = dma.hbm_to_vmem [thread:$0]  %s1210_s2, 256, %s38_s25, [#allocation8]  }
   0xf   :  { %s997_s8 = scalar_lea.vmem %s28_s27, 256  ;;  %p1002_p6 = scmp.lt.s32.totalorder %s28_s27, %s28_s27 }
  0x10   :  { %p998_p5 = scmp.ne.s32.totalorder %s28_s27, %s997_s8  ;;  %p1003_p7 = scmp.lt.s32.totalorder %s997_s8, %s997_s8 }
  0x12   :  { %p1004_p8 = por %p1003_p7, %p1002_p6 }
  0x14   :  { %p1005_p9 = pnand %p1004_p8, %p998_p5 }
  0x16   :  { %1008 = shalt.err (!%p1005_p9)
}
  0x17   :  { %30 = dma.hbm_to_vmem [thread:$0]  %s1209_s1, 256, %s28_s27, [#allocation4]  }
  0x18   :  { %s1089_s11 = smov [#allocation9]   ;;  %s1090_s13 = smov [#allocation10]  }
  0x19   :  { %s47_s12 = sshll.u32 %s1089_s11, 4  ;;  %s56_s14 = sshll.u32 %s1090_s13, 4  ;;  %s48_s12 = int_to_ptr.vmem [resolvable:$true] %s47_s12  ;;  %s57_s14 = int_to_ptr.vmem [resolvable:$true] %s56_s14 }
  0x1a   :  { %s1017_s15 = scalar_lea.vmem %s48_s12, 256  ;;  %p1022_p11 = scmp.lt.s32.totalorder %s48_s12, %s48_s12 }
  0x1b   :  { %p1018_p10 = scmp.ne.s32.totalorder %s48_s12, %s1017_s15  ;;  %p1023_p12 = scmp.lt.s32.totalorder %s1017_s15, %s1017_s15 }
  0x1d   :  { %p1024_p13 = por %p1023_p12, %p1022_p11 }
  0x1f   :  { %p1025_p0 = pnand %p1024_p13, %p1018_p10 }
  0x21   :  { %1028 = shalt.err (!%p1025_p0)
}
  0x22   :  { %50 = dma.hbm_to_vmem [thread:$0]  %s1211_s3, 256, %s48_s12, [#allocation8]  }
  0x23   :  { %s1037_s17 = scalar_lea.vmem %s57_s14, 16384  ;;  %p1042_p2 = scmp.lt.s32.totalorder %s57_s14, %s57_s14 }
  0x24   :  { %p1038_p1 = scmp.ne.s32.totalorder %s57_s14, %s1037_s17  ;;  %p1043_p3 = scmp.lt.s32.totalorder %s1037_s17, %s1037_s17 }
  0x26   :  { %p1044_p4 = por %p1043_p3, %p1042_p2 }
  0x28   :  { %p1045_p5 = pnand %p1044_p4, %p1038_p1 }
  0x2a   :  { %1048 = shalt.err (!%p1045_p5)
}
  0x2b   :  { %s1091_s1 = smov 128   ;;  %s1092_s18 = smov 8  }
  0x2c   :  { %62 = dma.hbm_to_vmem [thread:$0]  %s1212_s4, 16384, %s57_s14, [#allocation11], %s1091_s1, %s1091_s1, %s1092_s18  }
  0x2d   :  { %1077 = dma.done.wait [#allocation4], 256  }
  0x2e   :  { %1078 = vsyncadd [#allocation4], 4294967040 }
  0x2f   :  { %1079 = dma.done.wait [#allocation8], 512  }
  0x30   :  { %1080 = vsyncadd [#allocation8], 4294966784 }
  0x31   :  { %1081 = dma.done.wait [#allocation11], 16384  }
  0x32   :  { %1082 = vsyncadd [#allocation11], 4294950912  ;;  %v271_v0 = vld [vmem:[#allocation10 + $0xf8] sm:$0xff]  ;;  %v270_v4 = vld [vmem:[#allocation10 + $0xf0] sm:$0xff]  ;;  %v1093_v30 = vmov 1983009808   ;;  %v85_v32 = vlaneseq }
  0x33   :  { %v303_v1 = vld [vmem:[#allocation10 + $0x1f8] sm:$0xff]  ;;  %788 = vmatprep.subr.mxu0 %v271_v0  ;;  %v302_v5 = vld [vmem:[#allocation10 + $0x1f0] sm:$0xff]  ;;  %v269_v8 = vld [vmem:[#allocation10 + $0xe8] sm:$0xff]  ;;  %v83_v31 = vunpack.c.l.s4 %v1093_v30  ;;  %vm123_vm0 = vcmask 1041408   ;;  %vm712_vm2 = vcmask 7168   ;;  %s1094_s22 = smov [#allocation12]  }
  0x34   :  { %v255_v2 = vld [vmem:[#allocation10 + $0x78] sm:$0xff]  ;;  %829 = vmatprep.subr.mxu1 %v303_v1  ;;  %v254_v6 = vld [vmem:[#allocation10 + $0x70] sm:$0xff]  ;;  %v301_v9 = vld [vmem:[#allocation10 + $0x1e8] sm:$0xff]  ;;  %v1151_v42 = vshrl.u32 %v85_v32, 7  ;;  %s736_s23 = sshll.u32 %s1094_s22, 4  ;;  %s737_s23 = int_to_ptr.vmem [resolvable:$true] %s736_s23 }
  0x35   :  { %v287_v3 = vld [vmem:[#allocation10 + $0x178] sm:$0xff]  ;;  %789 = vmatpush3.msra.mxu0 %v255_v2  ;;  %v286_v7 = vld [vmem:[#allocation10 + $0x170] sm:$0xff]  ;;  %v253_v10 = vld [vmem:[#allocation10 + $0x68] sm:$0xff]  ;;  %v84_v41 = vunpack.c.0.s8 %v83_v31  ;;  %s1049_s24 = scalar_lea.vmem %s737_s23, 384  ;;  %p1054_p7 = scmp.lt.s32.totalorder %s737_s23, %s737_s23 }
  0x36   :  { %830 = vmatpush3.msra.mxu1 %v287_v3  ;;  %790 = vmatprep.subr.mxu0 %v270_v4  ;;  %v285_v11 = vld [vmem:[#allocation10 + $0x168] sm:$0xff]  ;;  %v268_v12 = vld [vmem:[#allocation10 + $0xe0] sm:$0xff]  ;;  %v267_v16 = vld [vmem:[#allocation10 + $0xd8] sm:$0xff]  ;;  %vm710_vm1 = vcmp.lt.s32.totalorder %v1151_v42, 2  ;;  %p1050_p6 = scmp.ne.s32.totalorder %s737_s23, %s1049_s24  ;;  %p1055_p8 = scmp.lt.s32.totalorder %s1049_s24, %s1049_s24 }
  0x37   :  { %831 = vmatprep.subr.mxu1 %v302_v5  ;;  %791 = vmatpush3.msra.mxu0 %v254_v6  ;;  %v300_v13 = vld [vmem:[#allocation10 + $0x1e0] sm:$0xff]  ;;  %v299_v17 = vld [vmem:[#allocation10 + $0x1d8] sm:$0xff]  ;;  %v266_v20 = vld [vmem:[#allocation10 + $0xd0] sm:$0xff]  ;;  %v1154_v51 = vsub.s32 %v84_v41, %v1151_v42 }
  0x38   :  { %832 = vmatpush3.msra.mxu1 %v286_v7  ;;  %792 = vmatprep.subr.mxu0 %v269_v8  ;;  %v252_v14 = vld [vmem:[#allocation10 + $0x60] sm:$0xff]  ;;  %v251_v18 = vld [vmem:[#allocation10 + $0x58] sm:$0xff]  ;;  %v298_v21 = vld [vmem:[#allocation10 + $0x1d0] sm:$0xff]  ;;  %p1056_p9 = por %p1055_p8, %p1054_p7 }
  0x39   :  { %833 = vmatprep.subr.mxu1 %v301_v9  ;;  %v284_v15 = vld [vmem:[#allocation10 + $0x160] sm:$0xff]  ;;  %793 = vmatpush3.msra.mxu0 %v253_v10  ;;  %v283_v19 = vld [vmem:[#allocation10 + $0x158] sm:$0xff]  ;;  %v250_v22 = vld [vmem:[#allocation10 + $0x50] sm:$0xff] }
  0x3a   :  { %834 = vmatpush3.msra.mxu1 %v285_v11  ;;  %794 = vmatprep.subr.mxu0 %v268_v12  ;;  %v282_v23 = vld [vmem:[#allocation10 + $0x150] sm:$0xff]  ;;  %v265_v24 = vld [vmem:[#allocation10 + $0xc8] sm:$0xff]  ;;  %v264_v28 = vld [vmem:[#allocation10 + $0xc0] sm:$0xff]  ;;  %p1057_p10 = pnand %p1056_p9, %p1050_p6 }
  0x3b   :  { %835 = vmatprep.subr.mxu1 %v300_v13  ;;  %795 = vmatpush3.msra.mxu0 %v252_v14  ;;  %v297_v25 = vld [vmem:[#allocation10 + $0x1c8] sm:$0xff]  ;;  %v296_v29 = vld [vmem:[#allocation10 + $0x1c0] sm:$0xff]  ;;  %v263_v35 = vld [vmem:[#allocation10 + $0xb8] sm:$0xff] }
  0x3c   :  { %836 = vmatpush3.msra.mxu1 %v284_v15  ;;  %796 = vmatprep.subr.mxu0 %v267_v16  ;;  %v249_v26 = vld [vmem:[#allocation10 + $0x48] sm:$0xff]  ;;  %v248_v33 = vld [vmem:[#allocation10 + $0x40] sm:$0xff]  ;;  %v295_v36 = vld [vmem:[#allocation10 + $0x1b8] sm:$0xff] }
  0x3d   :  { %837 = vmatprep.subr.mxu1 %v299_v17  ;;  %797 = vmatpush3.msra.mxu0 %v251_v18  ;;  %v281_v27 = vld [vmem:[#allocation10 + $0x148] sm:$0xff]  ;;  %v280_v34 = vld [vmem:[#allocation10 + $0x140] sm:$0xff]  ;;  %v247_v37 = vld [vmem:[#allocation10 + $0x38] sm:$0xff] }
  0x3e   :  { %838 = vmatpush3.msra.mxu1 %v283_v19  ;;  %798 = vmatprep.subr.mxu0 %v266_v20  ;;  %v279_v38 = vld [vmem:[#allocation10 + $0x138] sm:$0xff]  ;;  %v262_v39 = vld [vmem:[#allocation10 + $0xb0] sm:$0xff]  ;;  %v261_v45 = vld [vmem:[#allocation10 + $0xa8] sm:$0xff] }
  0x3f   :  { %839 = vmatprep.subr.mxu1 %v298_v21  ;;  %799 = vmatpush3.msra.mxu0 %v250_v22  ;;  %v294_v40 = vld [vmem:[#allocation10 + $0x1b0] sm:$0xff]  ;;  %v293_v46 = vld [vmem:[#allocation10 + $0x1a8] sm:$0xff]  ;;  %v260_v49 = vld [vmem:[#allocation10 + $0xa0] sm:$0xff] }
  0x40   :  { %840 = vmatpush3.msra.mxu1 %v282_v23  ;;  %800 = vmatprep.subr.mxu0 %v265_v24  ;;  %v246_v43 = vld [vmem:[#allocation10 + $0x30] sm:$0xff]  ;;  %v245_v47 = vld [vmem:[#allocation10 + $0x28] sm:$0xff]  ;;  %v292_v50 = vld [vmem:[#allocation10 + $0x1a0] sm:$0xff] }
  0x41   :  { %841 = vmatprep.subr.mxu1 %v297_v25  ;;  %801 = vmatpush3.msra.mxu0 %v249_v26  ;;  %v278_v44 = vld [vmem:[#allocation10 + $0x130] sm:$0xff]  ;;  %v277_v48 = vld [vmem:[#allocation10 + $0x128] sm:$0xff]  ;;  %v244_v52 = vld [vmem:[#allocation10 + $0x20] sm:$0xff] }
  0x42   :  { %842 = vmatpush3.msra.mxu1 %v281_v27  ;;  %802 = vmatprep.subr.mxu0 %v264_v28  ;;  %v276_v53 = vld [vmem:[#allocation10 + $0x120] sm:$0xff]  ;;  %v77_v54 = vld [vmem:[#allocation3] sm:$0xff]  ;;  %v259_v55 = vld [vmem:[#allocation10 + $0x98] sm:$0xff] }
  0x43   :  { %843 = vmatprep.subr.mxu1 %v296_v29  ;;  %803 = vmatpush3.msra.mxu0 %v248_v33  ;;  %v291_v56 = vld [vmem:[#allocation10 + $0x198] sm:$0xff]  ;;  %v81_v57 = vcombine.high %v77_v54, %v77_v54  ;;  %v258_v60 = vld [vmem:[#allocation10 + $0x90] sm:$0xff]  ;;  %v88_v62 = vrot.slane %v77_v54, %v1154_v51  ;;  %v257_v1 = vld [vmem:[#allocation10 + $0x88] sm:$0xff] }
  0x44   :  { %844 = vmatpush3.msra.mxu1 %v280_v34  ;;  %804 = vmatprep.subr.mxu0 %v263_v35  ;;  %v243_v58 = vld [vmem:[#allocation10 + $0x18] sm:$0xff]  ;;  %v290_v61 = vld [vmem:[#allocation10 + $0x190] sm:$0xff]  ;;  %v289_v2 = vld [vmem:[#allocation10 + $0x188] sm:$0xff] }
  0x45   :  { %845 = vmatprep.subr.mxu1 %v295_v36  ;;  %805 = vmatpush3.msra.mxu0 %v247_v37  ;;  %v275_v59 = vld [vmem:[#allocation10 + $0x118] sm:$0xff]  ;;  %v242_v63 = vld [vmem:[#allocation10 + $0x10] sm:$0xff]  ;;  %v95_v3 = vrot.slane %v81_v57, %v1154_v51  ;;  %v241_v4 = vld [vmem:[#allocation10 + $0x8] sm:$0xff]  ;;  %v96_v8 = vcombine.high %v88_v62, %v88_v62 }
  0x46   :  { %846 = vmatpush3.msra.mxu1 %v279_v38  ;;  %806 = vmatprep.subr.mxu0 %v262_v39  ;;  %v274_v0 = vld [vmem:[#allocation10 + $0x110] sm:$0xff]  ;;  %v273_v5 = vld [vmem:[#allocation10 + $0x108] sm:$0xff]  ;;  %v256_v6 = vld [vmem:[#allocation10 + $0x80] sm:$0xff] }
  0x47   :  { %847 = vmatprep.subr.mxu1 %v294_v40  ;;  %807 = vmatpush3.msra.mxu0 %v246_v43  ;;  %v288_v7 = vld [vmem:[#allocation10 + $0x180] sm:$0xff]  ;;  %v97_v11 = vcombine.high %v95_v3, %v95_v3  ;;  %v335_v12 = vld [vmem:[#allocation10 + $0x2f8] sm:$0xff]  ;;  %v334_v16 = vld [vmem:[#allocation10 + $0x2f0] sm:$0xff] }
  0x48   :  { %848 = vmatpush3.msra.mxu1 %v278_v44  ;;  %808 = vmatprep.subr.mxu0 %v261_v45  ;;  %v240_v9 = vld [vmem:[#allocation10] sm:$0xff]  ;;  %v367_v13 = vld [vmem:[#allocation10 + $0x3f8] sm:$0xff]  ;;  %v366_v17 = vld [vmem:[#allocation10 + $0x3f0] sm:$0xff] }
  0x49   :  { %849 = vmatprep.subr.mxu1 %v293_v46  ;;  %809 = vmatpush3.msra.mxu0 %v245_v47  ;;  %v272_v10 = vld [vmem:[#allocation10 + $0x100] sm:$0xff]  ;;  %v319_v14 = vld [vmem:[#allocation10 + $0x278] sm:$0xff]  ;;  %v318_v18 = vld [vmem:[#allocation10 + $0x270] sm:$0xff] }
  0x4a   :  { %850 = vmatpush3.msra.mxu1 %v277_v48  ;;  %810 = vmatprep.subr.mxu0 %v260_v49  ;;  %v351_v15 = vld [vmem:[#allocation10 + $0x378] sm:$0xff]  ;;  %v350_v19 = vld [vmem:[#allocation10 + $0x370] sm:$0xff]  ;;  %v333_v20 = vld [vmem:[#allocation10 + $0x2e8] sm:$0xff] }
  0x4b   :  { %851 = vmatprep.subr.mxu1 %v292_v50  ;;  %811 = vmatpush3.msra.mxu0 %v244_v52  ;;  %v365_v21 = vld [vmem:[#allocation10 + $0x3e8] sm:$0xff]  ;;  %v332_v24 = vld [vmem:[#allocation10 + $0x2e0] sm:$0xff]  ;;  %v331_v28 = vld [vmem:[#allocation10 + $0x2d8] sm:$0xff] }
  0x4c   :  { %852 = vmatpush3.msra.mxu1 %v276_v53  ;;  %812 = vmatprep.subr.mxu0 %v259_v55  ;;  %v317_v22 = vld [vmem:[#allocation10 + $0x268] sm:$0xff]  ;;  %v364_v25 = vld [vmem:[#allocation10 + $0x3e0] sm:$0xff]  ;;  %v363_v29 = vld [vmem:[#allocation10 + $0x3d8] sm:$0xff] }
  0x4d   :  { %853 = vmatprep.subr.mxu1 %v291_v56  ;;  %813 = vmatpush3.msra.mxu0 %v243_v58  ;;  %v349_v23 = vld [vmem:[#allocation10 + $0x368] sm:$0xff]  ;;  %v316_v26 = vld [vmem:[#allocation10 + $0x260] sm:$0xff]  ;;  %v315_v30 = vld [vmem:[#allocation10 + $0x258] sm:$0xff] }
  0x4e   :  { %854 = vmatpush3.msra.mxu1 %v275_v59  ;;  %814 = vmatprep.subr.mxu0 %v258_v60  ;;  %v348_v27 = vld [vmem:[#allocation10 + $0x360] sm:$0xff]  ;;  %v347_v31 = vld [vmem:[#allocation10 + $0x358] sm:$0xff]  ;;  %v330_v32 = vld [vmem:[#allocation10 + $0x2d0] sm:$0xff] }
  0x4f   :  { %855 = vmatprep.subr.mxu1 %v290_v61  ;;  %815 = vmatpush3.msra.mxu0 %v242_v63  ;;  %v362_v33 = vld [vmem:[#allocation10 + $0x3d0] sm:$0xff]  ;;  %v329_v36 = vld [vmem:[#allocation10 + $0x2c8] sm:$0xff]  ;;  %v132_v38 = vld [vmem:[#allocation7] sm:$0xff] }
  0x50   :  { %856 = vmatpush3.msra.mxu1 %v274_v0  ;;  %816 = vmatprep.subr.mxu0 %v257_v1  ;;  %v314_v34 = vld [vmem:[#allocation10 + $0x250] sm:$0xff]  ;;  %v361_v37 = vld [vmem:[#allocation10 + $0x3c8] sm:$0xff]  ;;  %v328_v41 = vld [vmem:[#allocation10 + $0x2c0] sm:$0xff]  ;;  %v136_v46 = vcombine.high %v132_v38, %v132_v38  ;;  %v143_v49 = vrot.slane %v132_v38, %v1154_v51 }
  0x51   :  { %857 = vmatprep.subr.mxu1 %v289_v2  ;;  %817 = vmatpush3.msra.mxu0 %v241_v4  ;;  %v346_v35 = vld [vmem:[#allocation10 + $0x350] sm:$0xff]  ;;  %v313_v39 = vld [vmem:[#allocation10 + $0x248] sm:$0xff]  ;;  %v360_v43 = vld [vmem:[#allocation10 + $0x3c0] sm:$0xff] }
  0x52   :  { %858 = vmatpush3.msra.mxu1 %v273_v5  ;;  %818 = vmatprep.subr.mxu0 %v256_v6  ;;  %v345_v40 = vld [vmem:[#allocation10 + $0x348] sm:$0xff]  ;;  %v312_v44 = vld [vmem:[#allocation10 + $0x240] sm:$0xff]  ;;  %v327_v47 = vld [vmem:[#allocation10 + $0x2b8] sm:$0xff]  ;;  %v150_v58 = vrot.slane %v136_v46, %v1154_v51  ;;  %v151_v61 = vcombine.high %v143_v49, %v143_v49 }
  0x53   :  { %859 = vmatprep.subr.mxu1 %v288_v7  ;;  %819 = vmatpush3.msra.mxu0 %v240_v9  ;;  %v344_v45 = vld [vmem:[#allocation10 + $0x340] sm:$0xff]  ;;  %v359_v48 = vld [vmem:[#allocation10 + $0x3b8] sm:$0xff]  ;;  %v326_v53 = vld [vmem:[#allocation10 + $0x2b0] sm:$0xff] }
  0x54   :  { %764 = vmatprep.mubr.msk.f32.mxu0 %vm123_vm0, %v96_v8  ;;  %860 = vmatpush3.msra.mxu1 %v272_v10  ;;  %v311_v50 = vld [vmem:[#allocation10 + $0x238] sm:$0xff]  ;;  %v358_v54 = vld [vmem:[#allocation10 + $0x3b0] sm:$0xff]  ;;  %v325_v59 = vld [vmem:[#allocation10 + $0x2a8] sm:$0xff]  ;;  %v152_v4 = vcombine.high %v150_v58, %v150_v58 }
  0x55   :  { %765 = vmatmul.mubr.msk.f32.vlgmr.msra.gmra.mxu0 %vm123_vm0, %v88_v62  ;;  %770 = vmatprep.mubr.msk.f32.mxu1 %vm123_vm0, %v97_v11  ;;  %v343_v52 = vld [vmem:[#allocation10 + $0x338] sm:$0xff]  ;;  %v186_v55 = vld [vmem:[#allocation9] sm:$0xff]  ;;  %v357_v60 = vld [vmem:[#allocation10 + $0x3a8] sm:$0xff] }
  0x56   :  { %870 = vmatprep.subr.mxu0 %v335_v12  ;;  %911 = vmatprep.subr.mxu1 %v367_v13  ;;  %v310_v56 = vld [vmem:[#allocation10 + $0x230] sm:$0xff]  ;;  %v309_v62 = vld [vmem:[#allocation10 + $0x228] sm:$0xff]  ;;  %v190_v63 = vcombine.high %v186_v55, %v186_v55  ;;  %v197_v1 = vrot.slane %v186_v55, %v1154_v51  ;;  %v324_v2 = vld [vmem:[#allocation10 + $0x2a0] sm:$0xff] }
  0x57   :  { %771 = vmatmul.mubr.msk.f32.vlgmr.msra.gmra.mxu1 %vm123_vm0, %v95_v3  ;;  %871 = vmatpush3.msra.mxu0 %v319_v14  ;;  %v342_v57 = vld [vmem:[#allocation10 + $0x330] sm:$0xff]  ;;  %v341_v0 = vld [vmem:[#allocation10 + $0x328] sm:$0xff]  ;;  %v356_v3 = vld [vmem:[#allocation10 + $0x3a0] sm:$0xff] }
  0x58   :  { %912 = vmatpush3.msra.mxu1 %v351_v15  ;;  %872 = vmatprep.subr.mxu0 %v334_v16  ;;  %v308_v5 = vld [vmem:[#allocation10 + $0x220] sm:$0xff]  ;;  %v78_v6 = vld [vmem:[#allocation3 + $0x8] sm:$0xff]  ;;  %v204_v9 = vrot.slane %v190_v63, %v1154_v51  ;;  %v205_v11 = vcombine.high %v197_v1, %v197_v1  ;;  %v133_v12 = vld [vmem:[#allocation7 + $0x8] sm:$0xff] }
  0x59   :  { %913 = vmatprep.subr.mxu1 %v366_v17  ;;  %873 = vmatpush3.msra.mxu0 %v318_v18  ;;  %v340_v7 = vld [vmem:[#allocation10 + $0x320] sm:$0xff]  ;;  %v323_v8 = vld [vmem:[#allocation10 + $0x298] sm:$0xff]  ;;  %v98_v14 = vcombine.high %v78_v6, %v78_v6  ;;  %v322_v16 = vld [vmem:[#allocation10 + $0x290] sm:$0xff] }
  0x5a   :  { %914 = vmatpush3.msra.mxu1 %v350_v19  ;;  %874 = vmatprep.subr.mxu0 %v333_v20  ;;  %v355_v10 = vld [vmem:[#allocation10 + $0x398] sm:$0xff]  ;;  %v354_v17 = vld [vmem:[#allocation10 + $0x390] sm:$0xff]  ;;  %v206_v18 = vcombine.high %v204_v9, %v204_v9  ;;  %v153_v19 = vcombine.high %v133_v12, %v133_v12 }
  0x5b   :  { %915 = vmatprep.subr.mxu1 %v365_v21  ;;  %875 = vmatpush3.msra.mxu0 %v317_v22  ;;  %v307_v13 = vld [vmem:[#allocation10 + $0x218] sm:$0xff]  ;;  %v306_v20 = vld [vmem:[#allocation10 + $0x210] sm:$0xff]  ;;  %v105_v21 = vrot.slane %v78_v6, %v1154_v51 }
  0x5c   :  { %916 = vmatpush3.msra.mxu1 %v349_v23  ;;  %876 = vmatprep.subr.mxu0 %v332_v24  ;;  %v339_v15 = vld [vmem:[#allocation10 + $0x318] sm:$0xff]  ;;  %v338_v23 = vld [vmem:[#allocation10 + $0x310] sm:$0xff]  ;;  %v321_v24 = vld [vmem:[#allocation10 + $0x288] sm:$0xff] }
  0x5d   :  { %917 = vmatprep.subr.mxu1 %v364_v25  ;;  %877 = vmatpush3.msra.mxu0 %v316_v26  ;;  %v187_v22 = vld [vmem:[#allocation9 + $0x8] sm:$0xff]  ;;  %v112_v25 = vrot.slane %v98_v14, %v1154_v51  ;;  %v353_v26 = vld [vmem:[#allocation10 + $0x388] sm:$0xff] }
  0x5e   :  { %918 = vmatpush3.msra.mxu1 %v348_v27  ;;  %878 = vmatprep.subr.mxu0 %v331_v28  ;;  %v305_v27 = vld [vmem:[#allocation10 + $0x208] sm:$0xff]  ;;  %v214_v38 = vrot.slane %v187_v22, %v1154_v51 }
  0x5f   :  { %919 = vmatprep.subr.mxu1 %v363_v29  ;;  %879 = vmatpush3.msra.mxu0 %v315_v30  ;;  %v337_v28 = vld [vmem:[#allocation10 + $0x308] sm:$0xff]  ;;  %v160_v29 = vrot.slane %v133_v12, %v1154_v51  ;;  %v167_v30 = vrot.slane %v153_v19, %v1154_v51 }
  0x60   :  { %920 = vmatpush3.msra.mxu1 %v347_v31  ;;  %880 = vmatprep.subr.mxu0 %v330_v32  ;;  %v207_v31 = vcombine.high %v187_v22, %v187_v22  ;;  %v320_v32 = vld [vmem:[#allocation10 + $0x280] sm:$0xff] }
  0x61   :  { %921 = vmatprep.subr.mxu1 %v362_v33  ;;  %881 = vmatpush3.msra.mxu0 %v314_v34  ;;  %v352_v33 = vld [vmem:[#allocation10 + $0x380] sm:$0xff]  ;;  %v113_v34 = vcombine.high %v105_v21, %v105_v21 }
  0x62   :  { %922 = vmatpush3.msra.mxu1 %v346_v35  ;;  %882 = vmatprep.subr.mxu0 %v329_v36  ;;  %v304_v35 = vld [vmem:[#allocation10 + $0x200] sm:$0xff]  ;;  %v114_v36 = vcombine.high %v112_v25, %v112_v25 }
  0x63   :  { %923 = vmatprep.subr.mxu1 %v361_v37  ;;  %883 = vmatpush3.msra.mxu0 %v313_v39  ;;  %v336_v37 = vld [vmem:[#allocation10 + $0x300] sm:$0xff]  ;;  %v168_v39 = vcombine.high %v160_v29, %v160_v29 }
  0x64   :  { %924 = vmatpush3.msra.mxu1 %v345_v40  ;;  %884 = vmatprep.subr.mxu0 %v328_v41  ;;  %v169_v40 = vcombine.high %v167_v30, %v167_v30  ;;  %v221_v41 = vrot.slane %v207_v31, %v1154_v51 }
  0x65   :  { %925 = vmatprep.subr.mxu1 %v360_v43  ;;  %885 = vmatpush3.msra.mxu0 %v312_v44  ;;  %v222_v43 = vcombine.high %v214_v38, %v214_v38 }
  0x66   :  { %926 = vmatpush3.msra.mxu1 %v344_v45  ;;  %886 = vmatprep.subr.mxu0 %v327_v47  ;;  %v223_v44 = vcombine.high %v221_v41, %v221_v41 }
  0x67   :  { %927 = vmatprep.subr.mxu1 %v359_v48  ;;  %887 = vmatpush3.msra.mxu0 %v311_v50 }
  0x68   :  { %928 = vmatpush3.msra.mxu1 %v343_v52  ;;  %888 = vmatprep.subr.mxu0 %v326_v53 }
  0x69   :  { %929 = vmatprep.subr.mxu1 %v358_v54  ;;  %889 = vmatpush3.msra.mxu0 %v310_v56  ;;  %v763_v56 = vld [vmem:[%s1213_s5] ss:$0 sm:$0xff] }
  0x6a   :  { %930 = vmatpush3.msra.mxu1 %v342_v57  ;;  %890 = vmatprep.subr.mxu0 %v325_v59 }
  0x6b   :  { %931 = vmatprep.subr.mxu1 %v357_v60  ;;  %766 = vmatprep.mubr.msk.f32.mxu0 %vm123_vm0, %v151_v61 }
  0x6c   :  { %891 = vmatpush3.msra.mxu0 %v309_v62  ;;  %932 = vmatpush3.msra.mxu1 %v341_v0 }
  0x6d   :  { %767 = vmatmul.mubr.msk.f32.gmra.mxu0 %vm123_vm0, %v143_v49  ;;  %892 = vmatprep.subr.mxu0 %v324_v2 }
  0x6e   :  { %933 = vmatprep.subr.mxu1 %v356_v3  ;;  %772 = vmatprep.mubr.msk.f32.mxu1 %vm123_vm0, %v152_v4 }
  0x6f   :  { %893 = vmatpush3.msra.mxu0 %v308_v5  ;;  %934 = vmatpush3.msra.mxu1 %v340_v7 }
  0x70   :  { %894 = vmatprep.subr.mxu0 %v323_v8  ;;  %773 = vmatmul.mubr.msk.f32.gmra.mxu1 %vm123_vm0, %v150_v58 }
  0x71   :  { %935 = vmatprep.subr.mxu1 %v355_v10  ;;  %768 = vmatprep.mubr.msk.f32.mxu0 %vm123_vm0, %v205_v11 }
  0x72   :  { %895 = vmatpush3.msra.mxu0 %v307_v13  ;;  %936 = vmatpush3.msra.mxu1 %v339_v15 }
  0x73   :  { %769 = vmatmul.mubr.msk.f32.gmra.mxu0 %vm123_vm0, %v197_v1  ;;  %896 = vmatprep.subr.mxu0 %v322_v16 }
  0x74   :  { %937 = vmatprep.subr.mxu1 %v354_v17  ;;  %774 = vmatprep.mubr.msk.f32.mxu1 %vm123_vm0, %v206_v18 }
  0x75   :  { %897 = vmatpush3.msra.mxu0 %v306_v20  ;;  %938 = vmatpush3.msra.mxu1 %v338_v23 }
  0x76   :  { %898 = vmatprep.subr.mxu0 %v321_v24  ;;  %775 = vmatmul.mubr.msk.f32.gmra.mxu1 %vm123_vm0, %v204_v9 }
  0x77   :  { %939 = vmatprep.subr.mxu1 %v353_v26  ;;  %899 = vmatpush3.msra.mxu0 %v305_v27 }
  0x78   :  { %940 = vmatpush3.msra.mxu1 %v337_v28  ;;  %900 = vmatprep.subr.mxu0 %v320_v32 }
  0x79   :  { %941 = vmatprep.subr.mxu1 %v352_v33  ;;  %901 = vmatpush3.msra.mxu0 %v304_v35  ;;  %v705_v35 = vstv %s1208_s0 }
  0x7a   :  { %776 = vmatprep.mubr.msk.f32.mxu0 %vm123_vm0, %v113_v34  ;;  %942 = vmatpush3.msra.mxu1 %v336_v37 }
  0x7b   :  { %782 = vmatprep.mubr.msk.f32.mxu1 %vm123_vm0, %v114_v36  ;;  %777 = vmatmul.mubr.msk.f32.vlgmr.msra.gmra.mxu0 %vm123_vm0, %v105_v21 }
  0x7c   :  { %783 = vmatmul.mubr.msk.f32.vlgmr.msra.gmra.mxu1 %vm123_vm0, %v112_v25  ;;  %778 = vmatprep.mubr.msk.f32.mxu0 %vm123_vm0, %v168_v39 }
  0x7d   :  { %784 = vmatprep.mubr.msk.f32.mxu1 %vm123_vm0, %v169_v40 }
  0x7f   :  { %779 = vmatmul.mubr.msk.f32.gmra.mxu0 %vm123_vm0, %v160_v29 }
  0x80   :  { %785 = vmatmul.mubr.msk.f32.gmra.mxu1 %vm123_vm0, %v167_v30  ;;  %780 = vmatprep.mubr.msk.f32.mxu0 %vm123_vm0, %v222_v43 }
  0x81   :  { %786 = vmatprep.mubr.msk.f32.mxu1 %vm123_vm0, %v223_v44 }
  0x83   :  { %781 = vmatmul.mubr.msk.f32.gmra.mxu0 %vm123_vm0, %v214_v38 }
  0x84   :  { %787 = vmatmul.mubr.msk.f32.gmra.mxu1 %vm123_vm0, %v221_v41 }
 0x115   :  { %v820_v51 = vpop.f32.mrf.mxu0 }
 0x117   :  { %v861_v45 = vpop.f32.mrf.mxu1  ;;  %v821_v46 = vpop.f32.mrf.mxu0 }
 0x118   :  { %v822_v54 = vadd.f32 %v821_v46, %v820_v51 }
 0x119   :  { %v862_v48 = vpop.f32.mrf.mxu1 }
 0x11a   :  { %v442_v60 = vadd.f32 %v822_v54, %v763_v56  ;;  %v863_v61 = vadd.f32 %v862_v48, %v861_v45 }
 0x11c   :  { %v522_v4 = vadd.f32 %v863_v61, %v442_v60 }
 0x12d   :  { %v823_v47 = vpop.f32.mrf.mxu0 }
 0x12f   :  { %v824_v50 = vpop.f32.mrf.mxu0 }
 0x130   :  { %v864_v49 = vpop.f32.mrf.mxu1  ;;  %v825_v58 = vadd.f32 %v824_v50, %v823_v47 }
 0x132   :  { %v865_v52 = vpop.f32.mrf.mxu1  ;;  %v447_v0 = vadd.f32 %v825_v58, %v763_v56 }
 0x133   :  { %v826_v53 = vpop.f32.mrf.mxu0  ;;  %v866_v1 = vadd.f32 %v865_v52, %v864_v49 }
 0x135   :  { %v827_v59 = vpop.f32.mrf.mxu0  ;;  %v527_v11 = vadd.f32 %v866_v1, %v447_v0 }
 0x136   :  { %v867_v55 = vpop.f32.mrf.mxu1  ;;  %v828_v5 = vadd.f32 %v827_v59, %v826_v53 }
 0x138   :  { %v868_v57 = vpop.f32.mrf.mxu1  ;;  %v452_v14 = vadd.f32 %v828_v5, %v763_v56 }
 0x139   :  { %v869_v15 = vadd.f32 %v868_v57, %v867_v55 }
 0x13b   :  { %v902_v62 = vpop.f32.mrf.mxu0  ;;  %v532_v24 = vadd.f32 %v869_v15, %v452_v14 }
 0x13c   :  { %v943_v63 = vpop.f32.mrf.mxu1 }
 0x13d   :  { %v903_v2 = vpop.f32.mrf.mxu0 }
 0x13e   :  { %v944_v3 = vpop.f32.mrf.mxu1  ;;  %v904_v6 = vadd.f32 %v903_v2, %v902_v62 }
 0x13f   :  { %v905_v7 = vpop.f32.mrf.mxu0  ;;  %v945_v10 = vadd.f32 %v944_v3, %v943_v63 }
 0x140   :  { %v946_v8 = vpop.f32.mrf.mxu1  ;;  %v602_v9 = vadd.f32 %v904_v6, %v522_v4 }
 0x141   :  { %v906_v12 = vpop.f32.mrf.mxu0 }
 0x142   :  { %v947_v13 = vpop.f32.mrf.mxu1  ;;  %v682_v16 = vadd.f32 %v945_v10, %v602_v9  ;;  %v907_v17 = vadd.f32 %v906_v12, %v905_v7 }
 0x143   :  { %v908_v18 = vpop.f32.mrf.mxu0  ;;  %v948_v21 = vadd.f32 %v947_v13, %v946_v8 }
 0x144   :  { %v949_v19 = vpop.f32.mrf.mxu1  ;;  %726 = vst [vmem:[#allocation12] sm:$0xff] %v682_v16  ;;  %v607_v20 = vadd.f32 %v907_v17, %v527_v11 }
 0x145   :  { %v909_v22 = vpop.f32.mrf.mxu0 }
 0x146   :  { %v950_v23 = vpop.f32.mrf.mxu1  ;;  %v910_v25 = vadd.f32 %v909_v22, %v908_v18  ;;  %v687_v26 = vadd.f32 %v948_v21, %v607_v20 }
 0x147   :  { %v951_v28 = vadd.f32 %v950_v23, %v949_v19 }
 0x148   :  { %v612_v27 = vadd.f32 %v910_v25, %v532_v24  ;;  %v695_v29 = vsub.f32 %v682_v16, %v687_v26  ;;  %728 = vst [vmem:[#allocation12 + $0x8] sm:$0xff] %v687_v26 }
 0x14a   :  { %v692_v30 = vadd.f32 %v951_v28, %v612_v27  ;;  %v696_v31 = vmul.f32 %v695_v29, %v695_v29 }
 0x14c   :  { %730 = vst [vmem:[#allocation12 + $0x10] sm:$0xff] %v692_v30  ;;  %697 = vadd.xlane.f32.xlu0 %v696_v31  ;;  %v699_v32 = vsub.f32 %v682_v16, %v692_v30 }
 0x14e   :  { %v700_v33 = vmul.f32 %v699_v32, %v699_v32 }
 0x150   :  { %701 = vadd.xlane.f32.xlu0 %v700_v33 }
 0x1d5   :  { %v698_v34 = vpop.xlane.xlu0 %697 }
 0x1d9   :  { %v702_v36 = vpop.xlane.xlu0 %701 }
 0x1da   :  { %v704_v37 = vsub.f32 %v698_v34, %v702_v36 }
 0x1dc   :  { %v706_v38 = vadd.f32 %v705_v35, %v704_v37 }
 0x1de   :  { %v707_v39 = vmax.f32 %v706_v38, 0.0 }
 0x1e0   :  { %v711_v40 = vsel %vm710_vm1, %v707_v39, 0.0 }
 0x1e1   :  { %v713_v41 = vsel %vm712_vm2, %v711_v40, 0.0 }
 0x1e2   :  { %714 = vadd.xlane.f32.xlu1 %v713_v41 }
 0x1e3   :  { %1060 = shalt.err (!%p1057_p10)
}
 0x1e4   :  { %742 = dma.vmem_to_hbm [thread:$0]  %s737_s23, 384, %s1214_s6, [#allocation5], %s1091_s1, %s1091_s1, %s1092_s18  }
 0x1e5   :  { %s1095_s28 = smov [#allocation13]  }
 0x26b   :  { %v715_v42 = vpop.xlane.xlu1 %714 }
 0x26c   :  { %v716_v43 = vrot.slane %v715_v42, 4 }
 0x26e   :  { %v717_v44 = vadd.f32 %v716_v43, %v715_v42 }
 0x270   :  { %v718_v51 = vrot.slane %v717_v44, 2 }
 0x272   :  { %v719_v45 = vadd.f32 %v718_v51, %v717_v44 }
 0x274   :  { %v720_v46 = vrot.slane %v719_v45, 1 }
 0x276   :  { %v721_v47 = vadd.f32 %v720_v46, %v719_v45 }
 0x278   :  { %952 = vpush %v721_v47 }
 0x2a9   :  { %s953_s26 = spop %952 }
 0x2aa   :  { %s723_s27 = smul.f32 0.5, %s953_s26 }
 0x2ac   :  { %725 = sst [smem:[#allocation13]] %s723_s27 }
 0x2ad   :  { %750 = dma.smem_to_hbm %s1095_s28, 16, %s1215_s7, [#allocation6]  }
 0x2ae   :  { %1083 = dma.done.wait [#allocation5], 384  }
 0x2af   :  { %1084 = vsyncadd [#allocation5], 4294966912 }
 0x2b0   :  { %1085 = dma.done.wait [#allocation6], 16  }
 0x2b1   :  { %1086 = vsyncadd [#allocation6], 4294967280 }
 0x2b2   :  { %757 = sfence }
 0x2b3   :  { %758 = vsyncpa [#allocation4], 1 }
 0x2b4   :  { %759 = vsyncpa [#allocation8], 1 }
 0x2b5   :  { %760 = vsyncpa [#allocation11], 1 }
 0x2b6   :  { %761 = vsyncpa [#allocation5], 1 }
 0x2b7   :  { %762 = vsyncpa [#allocation6], 1 }

</bundles_post_ra>
